<compile_context>
chip_gen: v7x
topology: tpu7x:2x2x1
jax: 0.10.0
libtpu: 0.0.40
codegen_flags: <defaults>
</compile_context>

<pallas_src>
import functools

import jax
import jax.numpy as jnp
from jax.experimental import pallas as pl
from jax.experimental.pallas import tpu as pltpu


def _vmem_limit_bytes(buffer_bytes):
    """Scoped-VMEM cap: never below the 32 MiB default, never above 128 MiB."""
    return int(min(128 * 1024 * 1024,
                   max(2 * buffer_bytes + (1 << 20), 32 * 1024 * 1024)))


# -----------------------------------------------------------------------------
# shared gate math (static sigmoid/tanh split — no dual evaluation)
# -----------------------------------------------------------------------------
def _gate_math(gates, c_old, hidden_dim):
    """gates: (B, 4H) f32 pre-activations [i|f|o|g]; c_old: (B, H) f32."""
    H = hidden_dim
    sig = jax.nn.sigmoid(gates[:, : 3 * H])     # i, f, o lanes
    g = jnp.tanh(gates[:, 3 * H:])              # g lanes
    i = sig[:, 0 * H: 1 * H]
    f = sig[:, 1 * H: 2 * H]
    o = sig[:, 2 * H: 3 * H]
    c_new = f * c_old + i * g
    h_new = o * jnp.tanh(c_new)
    return o, c_new, h_new


# -----------------------------------------------------------------------------
# single-step kernel (module forward): x and h passed separately, two dots
# -----------------------------------------------------------------------------
def _lstm_step_kernel(x_ref, h_ref, c_ref, wx_ref, wh_ref, b_ref,
                      y_ref, c_out_ref, h_out_ref, *, hidden_dim, matmul_dtype):
    x = x_ref[...]
    h = h_ref[...]
    if matmul_dtype is not None:                 # weights already pre-cast in wrapper
        x = x.astype(matmul_dtype)
        h = h.astype(matmul_dtype)
    gates = (jnp.dot(x, wx_ref[...], preferred_element_type=jnp.float32)
             + jnp.dot(h, wh_ref[...], preferred_element_type=jnp.float32)
             + b_ref[...].astype(jnp.float32))
    o, c_new, h_new = _gate_math(gates, c_ref[...].astype(jnp.float32), hidden_dim)
    y_ref[...] = o.astype(y_ref.dtype)
    c_out_ref[...] = c_new.astype(c_out_ref.dtype)
    h_out_ref[...] = h_new.astype(h_out_ref.dtype)


def lstm_cell_v2(x, cur_state, params, *, matmul_dtype=None):
    """Pallas equivalent of LSTMcell_v2.forward. Returns (y, (c, h))."""
    c, h = cur_state
    w, b = params                                # w: (D+H, 4H), b: (1, 4H)
    B, D = x.shape
    H = h.shape[1]
    assert w.shape == (D + H, 4 * H) and b.shape == (1, 4 * H)

    wx, wh = w[:D], w[D:]
    if matmul_dtype is not None:                 # one-time weight cast
        wx = wx.astype(matmul_dtype)
        wh = wh.astype(matmul_dtype)

    io_sz = jnp.dtype(x.dtype).itemsize
    w_sz = jnp.dtype(wx.dtype).itemsize
    buf_bytes = ((B * D + 5 * B * H) * io_sz
                 + (D + H) * 4 * H * w_sz
                 + 4 * H * jnp.dtype(b.dtype).itemsize)

    vmem = functools.partial(pl.BlockSpec, memory_space=pltpu.MemorySpace.VMEM)
    kernel = functools.partial(_lstm_step_kernel, hidden_dim=H,
                               matmul_dtype=matmul_dtype)

    y, c_new, h_new = pl.pallas_call(
        kernel,
        out_shape=(
            jax.ShapeDtypeStruct((B, H), x.dtype),
            jax.ShapeDtypeStruct((B, H), x.dtype),
            jax.ShapeDtypeStruct((B, H), x.dtype),
        ),
        in_specs=[vmem() for _ in range(6)],
        out_specs=(vmem(), vmem(), vmem()),
        compiler_params=pltpu.CompilerParams(
            vmem_limit_bytes=_vmem_limit_bytes(buf_bytes)),
    )(x, h, c, wx, wh, b)
    return y, (c_new, h_new)


# -----------------------------------------------------------------------------
# fused sequence kernel: hoisted x-projection, chunked time axis, Wh resident,
# c/h carried in resident output blocks, unrolled inner step loop.
# -----------------------------------------------------------------------------
def _lstm_seq_kernel(gx_ref, c0_ref, h0_ref, wh_ref,
                     ys_ref, c_ref, h_ref, *, hidden_dim, time_chunk, matmul_dtype):
    H = hidden_dim

    @pl.when(pl.program_id(1) == 0)              # first time-chunk: load init state
    def _():
        c_ref[...] = c0_ref[...]
        h_ref[...] = h0_ref[...]

    wh = wh_ref[...]                             # resident; pre-cast in the wrapper

    def step(s, carry):
        c, h = carry
        h_mm = h if matmul_dtype is None else h.astype(matmul_dtype)
        gates = gx_ref[s] + jnp.dot(h_mm, wh, preferred_element_type=jnp.float32)
        o, c_new, h_new = _gate_math(gates, c, H)
        ys_ref[s] = o.astype(ys_ref.dtype)
        return c_new, h_new

    c = c_ref[...].astype(jnp.float32)
    h = h_ref[...].astype(jnp.float32)
    c, h = jax.lax.fori_loop(0, time_chunk, step, (c, h), unroll=True)
    c_ref[...] = c.astype(c_ref.dtype)
    h_ref[...] = h.astype(h_ref.dtype)


def lstm_cell_v2_sequence(xs, init_state, params, *, matmul_dtype=None,
                          time_chunk=8, num_batch_blocks=1):
    """Run T steps of the cell inside one pallas_call. Returns (ys, (c_T, h_T))."""
    c0, h0 = init_state
    w, b = params
    T, B, D = xs.shape
    H = h0.shape[1]
    assert w.shape == (D + H, 4 * H) and b.shape == (1, 4 * H)

    wx, wh = w[:D], w[D:]
    x_flat = xs.reshape(T * B, D)
    if matmul_dtype is not None:                 # one-time cast of MXU operands
        wx = wx.astype(matmul_dtype)
        wh = wh.astype(matmul_dtype)
        x_flat = x_flat.astype(matmul_dtype)

    # Hoisted input projection: one large parallel matmul instead of T tiny ones.
    gx = (jnp.dot(x_flat, wx, preferred_element_type=jnp.float32)
          + b.astype(jnp.float32)).reshape(T, B, 4 * H)

    # Time-chunk size: largest divisor of T not exceeding `time_chunk`.
    tc = max(1, min(time_chunk, T))
    while T % tc != 0:
        tc -= 1
    n_t = T // tc

    # Optional "parallel" batch-block axis (v7x second TensorCore). Keep the
    # per-block batch a multiple of 8 (sublane) or fall back to a single block.
    nbb = max(1, min(num_batch_blocks, B))
    if B % nbb != 0 or (nbb > 1 and (B // nbb) % 8 != 0):
        nbb = 1
    bb = B // nbb

    kernel = functools.partial(_lstm_seq_kernel, hidden_dim=H,
                               time_chunk=tc, matmul_dtype=matmul_dtype)

    grid_spec = pltpu.PrefetchScalarGridSpec(
        num_scalar_prefetch=0,
        grid=(nbb, n_t),                                   # (parallel, time)
        in_specs=[
            pl.BlockSpec((tc, bb, 4 * H), lambda ib, it: (it, ib, 0)),   # G_x chunk
            pl.BlockSpec((bb, H), lambda ib, it: (ib, 0),
                         pipeline_mode=pl.Buffered(1)),    # c0: never re-DMAs
            pl.BlockSpec((bb, H), lambda ib, it: (ib, 0),
                         pipeline_mode=pl.Buffered(1)),    # h0: never re-DMAs
            pl.BlockSpec((H, 4 * H), lambda ib, it: (0, 0),
                         pipeline_mode=pl.Buffered(1)),    # Wh resident, single-buf
        ],
        out_specs=(
            pl.BlockSpec((tc, bb, H), lambda ib, it: (it, ib, 0)),       # y chunk
            pl.BlockSpec((bb, H), lambda ib, it: (ib, 0)),               # c carried
            pl.BlockSpec((bb, H), lambda ib, it: (ib, 0)),               # h carried
        ),
    )

    io_sz = jnp.dtype(xs.dtype).itemsize
    wh_sz = jnp.dtype(wh.dtype).itemsize
    buf_bytes = (2 * tc * bb * 4 * H * 4          # G_x blocks (f32, double-buffered)
                 + 2 * bb * H * io_sz             # c0, h0 (single-buffered)
                 + H * 4 * H * wh_sz              # Wh (single-buffered)
                 + 2 * tc * bb * H * io_sz        # ys blocks (double-buffered)
                 + 2 * 2 * bb * H * io_sz)        # carried c, h outputs

    flops = T * 2 * B * H * 4 * H                 # only h @ Wh is in-kernel
    transcendentals = T * B * 5 * H               # 3H sigmoid + 2H tanh per step
    bytes_accessed = (T * B * 4 * H * 4 + T * B * H * io_sz
                      + H * 4 * H * wh_sz + 4 * B * H * io_sz)

    ys, c_T, h_T = pl.pallas_call(
        kernel,
        out_shape=(
            jax.ShapeDtypeStruct((T, B, H), xs.dtype),
            jax.ShapeDtypeStruct((B, H), xs.dtype),
            jax.ShapeDtypeStruct((B, H), xs.dtype),
        ),
        grid_spec=grid_spec,
        compiler_params=pltpu.CompilerParams(
            dimension_semantics=("parallel", "arbitrary"),
            vmem_limit_bytes=_vmem_limit_bytes(buf_bytes)),
        cost_estimate=pl.CostEstimate(flops=flops,
                                      transcendentals=transcendentals,
                                      bytes_accessed=bytes_accessed),
    )(gx, c0, h0, wh)
    return ys, (c_T, h_T)


# -----------------------------------------------------------------------------
# params + pure-JAX reference (module semantics)
# -----------------------------------------------------------------------------
def init_params(key, input_dim, hidden_dim, dtype=jnp.float32):
    """Mimics nn.Linear(input_dim + hidden_dim, 4 * hidden_dim)."""
    in_features = input_dim + hidden_dim
    out_features = 4 * hidden_dim
    bound = 1.0 / float(in_features) ** 0.5
    kw, kb = jax.random.split(key)
    w = jax.random.uniform(kw, (out_features, in_features), dtype, -bound, bound)
    b = jax.random.uniform(kb, (out_features,), dtype, -bound, bound)
    return w.T, b.reshape(1, out_features)        # (D+H, 4H), (1, 4H)


def reference_forward(x, cur_state, params):
    c, h = cur_state
    w, b = params
    H = h.shape[1]
    gates = jnp.concatenate([x, h], axis=1) @ w + b
    cc_i, cc_f, cc_o, cc_g = (gates[:, k * H:(k + 1) * H] for k in range(4))
    i = jax.nn.sigmoid(cc_i)
    f = jax.nn.sigmoid(cc_f)
    o = jax.nn.sigmoid(cc_o)
    g = jnp.tanh(cc_g)
    c_new = f * c + i * g
    h_new = o * jnp.tanh(c_new)
    return o, (c_new, h_new)


# -----------------------------------------------------------------------------
if __name__ == "__main__":
    batch, input_dim, hidden_dim, seq_len = 8, 4, 32, 8

    key = jax.random.PRNGKey(0)
    k_x, k_xs, k_c, k_h, k_p = jax.random.split(key, 5)

    x = jax.random.normal(k_x, (batch, input_dim), jnp.float32)
    xs = jax.random.normal(k_xs, (seq_len, batch, input_dim), jnp.float32)
    c0 = jax.random.normal(k_c, (batch, hidden_dim), jnp.float32)
    h0 = jax.random.normal(k_h, (batch, hidden_dim), jnp.float32)
    params = init_params(k_p, input_dim, hidden_dim)

    # --- single-step forward (exact module semantics) ------------------------
    y, (c1, h1) = lstm_cell_v2(x, (c0, h0), params)
    jax.block_until_ready((y, c1, h1))
    y_r, (c_r, h_r) = reference_forward(x, (c0, h0), params)
    assert jnp.allclose(y, y_r, atol=1e-5, rtol=1e-5)
    assert jnp.allclose(c1, c_r, atol=1e-5, rtol=1e-5)
    assert jnp.allclose(h1, h_r, atol=1e-5, rtol=1e-5)

    # --- fused sequence kernel (f32 default; recommended on v5e) -------------
    ys, (cT, hT) = lstm_cell_v2_sequence(xs, (c0, h0), params)
    jax.block_until_ready((ys, cT, hT))

    c_seq, h_seq = c0, h0
    ys_ref = []
    for t in range(seq_len):
        y_t, (c_seq, h_seq) = reference_forward(xs[t], (c_seq, h_seq), params)
        ys_ref.append(y_t)
    ys_ref = jnp.stack(ys_ref)
    assert jnp.allclose(ys, ys_ref, atol=1e-4, rtol=1e-4)
    assert jnp.allclose(cT, c_seq, atol=1e-4, rtol=1e-4)
    assert jnp.allclose(hT, h_seq, atol=1e-4, rtol=1e-4)

    # --- bf16 MXU-input fast path (v6e/v7x); gate math stays f32 --------------
    ys_bf, (cT_bf, hT_bf) = lstm_cell_v2_sequence(xs, (c0, h0), params,
                                                  matmul_dtype=jnp.bfloat16)
    jax.block_until_ready((ys_bf, cT_bf, hT_bf))
    assert jnp.allclose(ys_bf, ys_ref, atol=5e-2, rtol=5e-2)
    assert jnp.allclose(cT_bf, c_seq, atol=5e-2, rtol=5e-2)
    assert jnp.allclose(hT_bf, h_seq, atol=5e-2, rtol=5e-2)

    print("KERNEL_OK")
</pallas_src>

<mosaic_0001>
module attributes {stable_mosaic.version = 11 : i64} {
  func.func @_lstm_step_kernel(%arg0: memref<8x4xf32, #tpu.memory_space<vmem>>, %arg1: memref<8x32xf32, #tpu.memory_space<vmem>>, %arg2: memref<8x32xf32, #tpu.memory_space<vmem>>, %arg3: memref<4x128xf32, #tpu.memory_space<vmem>>, %arg4: memref<32x128xf32, #tpu.memory_space<vmem>>, %arg5: memref<1x128xf32, #tpu.memory_space<vmem>>, %arg6: memref<8x32xf32, #tpu.memory_space<vmem>>, %arg7: memref<8x32xf32, #tpu.memory_space<vmem>>, %arg8: memref<8x32xf32, #tpu.memory_space<vmem>>) attributes {dimension_semantics = [], scalar_prefetch = 0 : i64, scratch_operands = 0 : i64, tpu.core_type = #tpu.core_type<tc>} {
    %c0 = arith.constant 0 : index
    %c0_0 = arith.constant 0 : index
    %0 = vector.load %arg0[%c0, %c0_0] : memref<8x4xf32, #tpu.memory_space<vmem>>, vector<8x4xf32>
    %c0_1 = arith.constant 0 : index
    %c0_2 = arith.constant 0 : index
    %1 = vector.load %arg1[%c0_1, %c0_2] : memref<8x32xf32, #tpu.memory_space<vmem>>, vector<8x32xf32>
    %c0_3 = arith.constant 0 : index
    %c0_4 = arith.constant 0 : index
    %2 = vector.load %arg3[%c0_3, %c0_4] : memref<4x128xf32, #tpu.memory_space<vmem>>, vector<4x128xf32>
    %cst = arith.constant dense<0.000000e+00> : vector<8x128xf32>
    %3 = tpu.matmul %0, %2, %cst {dimension_numbers = #tpu.dot_dimension_numbers<[1], [0], [0], [1], [0, 0, 1, 1], [], []>} : vector<8x4xf32>, vector<4x128xf32>, vector<8x128xf32> -> vector<8x128xf32>
    %c0_5 = arith.constant 0 : index
    %c0_6 = arith.constant 0 : index
    %4 = vector.load %arg4[%c0_5, %c0_6] : memref<32x128xf32, #tpu.memory_space<vmem>>, vector<32x128xf32>
    %cst_7 = arith.constant dense<0.000000e+00> : vector<8x128xf32>
    %5 = tpu.matmul %1, %4, %cst_7 {dimension_numbers = #tpu.dot_dimension_numbers<[1], [0], [0], [1], [0, 0, 1, 1], [], []>} : vector<8x32xf32>, vector<32x128xf32>, vector<8x128xf32> -> vector<8x128xf32>
    %6 = arith.addf %3, %5 : vector<8x128xf32>
    %c0_8 = arith.constant 0 : index
    %c0_9 = arith.constant 0 : index
    %7 = vector.load %arg5[%c0_8, %c0_9] : memref<1x128xf32, #tpu.memory_space<vmem>>, vector<1x128xf32>
    %8 = vector.broadcast %7 : vector<1x128xf32> to vector<8x128xf32>
    %9 = arith.addf %6, %8 : vector<8x128xf32>
    %c0_10 = arith.constant 0 : index
    %c0_11 = arith.constant 0 : index
    %10 = vector.load %arg2[%c0_10, %c0_11] : memref<8x32xf32, #tpu.memory_space<vmem>>, vector<8x32xf32>
    %11 = vector.extract_strided_slice %9 {offsets = [0, 0], sizes = [8, 96], strides = [1, 1]} : vector<8x128xf32> to vector<8x96xf32>
    %12 = arith.negf %11 : vector<8x96xf32>
    %13 = math.exp %12 : vector<8x96xf32>
    %cst_12 = arith.constant 1.000000e+00 : f32
    %14 = vector.broadcast %cst_12 : f32 to vector<8x96xf32>
    %15 = arith.addf %14, %13 : vector<8x96xf32>
    %16 = arith.divf %14, %15 : vector<8x96xf32>
    %17 = vector.extract_strided_slice %9 {offsets = [0, 96], sizes = [8, 32], strides = [1, 1]} : vector<8x128xf32> to vector<8x32xf32>
    %18 = math.tanh %17 : vector<8x32xf32>
    %19 = vector.extract_strided_slice %16 {offsets = [0, 0], sizes = [8, 32], strides = [1, 1]} : vector<8x96xf32> to vector<8x32xf32>
    %20 = vector.extract_strided_slice %16 {offsets = [0, 32], sizes = [8, 32], strides = [1, 1]} : vector<8x96xf32> to vector<8x32xf32>
    %21 = vector.extract_strided_slice %16 {offsets = [0, 64], sizes = [8, 32], strides = [1, 1]} : vector<8x96xf32> to vector<8x32xf32>
    %22 = arith.mulf %20, %10 : vector<8x32xf32>
    %23 = arith.mulf %19, %18 : vector<8x32xf32>
    %24 = arith.addf %22, %23 : vector<8x32xf32>
    %25 = math.tanh %24 : vector<8x32xf32>
    %26 = arith.mulf %21, %25 : vector<8x32xf32>
    %c0_13 = arith.constant 0 : index
    %c0_14 = arith.constant 0 : index
    %27 = vector.load %arg6[%c0_13, %c0_14] : memref<8x32xf32, #tpu.memory_space<vmem>>, vector<8x32xf32>
    tpu.vector_store %arg6[%c0_13, %c0_14], %21 {strides = array<i32>} : memref<8x32xf32, #tpu.memory_space<vmem>>, vector<8x32xf32>,
    %c0_15 = arith.constant 0 : index
    %c0_16 = arith.constant 0 : index
    %28 = vector.load %arg7[%c0_15, %c0_16] : memref<8x32xf32, #tpu.memory_space<vmem>>, vector<8x32xf32>
    tpu.vector_store %arg7[%c0_15, %c0_16], %24 {strides = array<i32>} : memref<8x32xf32, #tpu.memory_space<vmem>>, vector<8x32xf32>,
    %c0_17 = arith.constant 0 : index
    %c0_18 = arith.constant 0 : index
    %29 = vector.load %arg8[%c0_17, %c0_18] : memref<8x32xf32, #tpu.memory_space<vmem>>, vector<8x32xf32>
    tpu.vector_store %arg8[%c0_17, %c0_18], %26 {strides = array<i32>} : memref<8x32xf32, #tpu.memory_space<vmem>>, vector<8x32xf32>,
    return
  }
}

</mosaic_0001>

<bundles_post_ra>
// kernel: tpu_custom_call.1
= control target key start
LH: loop header
LB: loop body
LE: loop exit
PB: predicated region body
PF: predicated region fallthrough
CT: control target
= control target key end

     0   :  { %14 = vsyncpa [#allocation3], 0  ;;  %s567_s0 = inlined_call_operand.vmem [shape: f32[8,4], index: 0, kind: input, shape index: {}]   ;;  %s568_s1 = inlined_call_operand.vmem [shape: f32[8,32], index: 1, kind: input, shape index: {}]   ;;  %s569_s2 = inlined_call_operand.vmem [shape: f32[8,32], index: 2, kind: input, shape index: {}]   ;;  %s570_s3 = inlined_call_operand.vmem [shape: f32[4,128], index: 3, kind: input, shape index: {}]   ;;  %s571_s4 = inlined_call_operand.hbm [shape: f32[32,128], index: 4, kind: input, shape index: {}]   ;;  %s572_s5 = inlined_call_operand.vmem [shape: f32[1,128], index: 5, kind: input, shape index: {}]   ;;  %s573_s6 = inlined_call_operand.hbm [shape: f32[8,32], index: 6, kind: output, shape index: {0}]   ;;  %s574_s7 = inlined_call_operand.hbm [shape: f32[8,32], index: 7, kind: output, shape index: {1}]   ;;  %s575_s8 = inlined_call_operand.hbm [shape: f32[8,32], index: 8, kind: output, shape index: {2}]  }
   0x1   :  { %15 = vsyncpa [#allocation4], 0 }
   0x2   :  { %16 = vsyncpa [#allocation7], 0  ;;  %s443_s27 = smov [#allocation2]   ;;  %s349_s9 = scalar_lea.hbm %s571_s4, 512 }
   0x3   :  { %s30_s28 = sshll.u32 %s443_s27, 4  ;;  %p350_p0 = scmp.ne.s32.totalorder %s571_s4, %s349_s9  ;;  %s31_s28 = int_to_ptr.vmem [resolvable:$true] %s30_s28 }
   0x4   :  { %p353_p1 = scmp.lt.u32.totalorder %s349_s9, %s571_s4 }
   0x6   :  { %p355_p2 = pnand %p353_p1, %p350_p0 }
   0x8   :  { %358 = shalt.err (!%p355_p2)
}
   0x9   :  { %s359_s14 = scalar_lea.vmem %s31_s28, 512  ;;  %p364_p4 = scmp.lt.s32.totalorder %s31_s28, %s31_s28 }
   0xa   :  { %p360_p3 = scmp.ne.s32.totalorder %s31_s28, %s359_s14  ;;  %p365_p5 = scmp.lt.s32.totalorder %s359_s14, %s359_s14 }
   0xc   :  { %p366_p6 = por %p365_p5, %p364_p4 }
   0xe   :  { %p367_p7 = pnand %p366_p6, %p360_p3 }
  0x10   :  { %370 = shalt.err (!%p367_p7)
}
  0x11   :  { %s444_s15 = smov 128   ;;  %s445_s16 = smov 8  }
  0x12   :  { %36 = dma.hbm_to_vmem [thread:$0]  %s571_s4, 512, %s31_s28, [#allocation3], %s444_s15, %s444_s15, %s445_s16  }
  0x13   :  { %437 = dma.done.wait [#allocation3], 512  }
  0x14   :  { %438 = vsyncadd [#allocation3], 4294966784  ;;  %v446_v0 = vmov 0.0|0.0   ;;  %v447_v1 = vmov 0.0   ;;  %vm448_vm0 = vmmov 0   ;;  %vm127_vm1 = vcmask 1043456  }
  0x15   :  { %323 = vmatprep.subr.bf16.mxu0 %v446_v0  ;;  %318 = vmatprep.subr.mxu1 %v447_v1  ;;  %v45_v2 = vld [vmem:[#allocation2] sm:$0xff]  ;;  %v46_v3 = vld [vmem:[#allocation2 + $0x8] sm:$0xff]  ;;  %v47_v4 = vld [vmem:[#allocation2 + $0x10] sm:$0xff]  ;;  %vm123_vm2 = vcmask 31744   ;;  %vm49_vm3 = vcmask 261120  }
  0x16   :  { %320 = vmatprep.mubr.msk.f32.mxu1 %vm448_vm0, %v447_v1  ;;  %315 = vmatprep.mubr.msk.f32.mxu0 %vm448_vm0, %v447_v1  ;;  %v324_v5 = vpack.c.bf16 %v46_v3, %v45_v2  ;;  %v48_v6 = vld [vmem:[#allocation2 + $0x18] sm:$0xff]  ;;  %v44_v7 = vld [vmem:[%s570_s3] sm:$0xf] }
  0x17   :  { %v42_v8 = vld [vmem:[%s567_s0] sm:$0xff]  ;;  %319 = vmatpush3.msk.msra.mxu1 %vm127_vm1, %v44_v7  ;;  %v327_v9 = vpack.c.bf16 %v48_v6, %v47_v4  ;;  %s449_s0 = smov 32  }
  0x18   :  { %325 = vmatpush3.bf16.msra.mxu0 %v324_v5  ;;  %321 = vmatmul.mubr.msk.f32.vlgmr.msra.gmra.mrb[0].mxu1 %vm123_vm2, %v42_v8  ;;  %v43_v10 = vld [vmem:[%s568_s1] sm:$0xff]  ;;  %s450_s1 = smov 96  }
  0x19   :  { %326 = vmatprep.subr.bf16.mxu0 %v446_v0  ;;  %v298_v14 = vld [vmem:[%s572_s5] ss:$0 sm:$0xff]  ;;  %s452_s5 = smov [#allocation6]  }
  0x1a   :  { %v209_v19 = vld [vmem:[%s569_s2] sm:$0xff]  ;;  %s451_s2 = smov 64   ;;  %s269_s27 = sshll.u32 %s452_s5, 4  ;;  %s270_s27 = int_to_ptr.vmem [resolvable:$true] %s269_s27 }
  0x1b   :  { %s371_s28 = scalar_lea.vmem %s270_s27, 128  ;;  %p376_p9 = scmp.lt.s32.totalorder %s270_s27, %s270_s27 }
  0x1c   :  { %328 = vmatpush3.bf16.msra.mxu0 %v327_v9  ;;  %p372_p8 = scmp.ne.s32.totalorder %s270_s27, %s371_s28  ;;  %p377_p10 = scmp.lt.s32.totalorder %s371_s28, %s371_s28 }
  0x1e   :  { %p378_p11 = por %p377_p10, %p376_p9 }
  0x1f   :  { %316 = vmatmul.mubr.msk.f32.vlgmr.msra.gmra.mrb[0].mxu0 %vm49_vm3, %v43_v10 }
  0x20   :  { %p379_p12 = pnand %p378_p11, %p372_p8 }
  0xeb   :  { %v197_v11 = vpop.f32.mrb[0].mxu1 }
  0xec   :  { %v322_v12 = vpop.f32.mrb[1].mxu1 }
  0xf2   :  { %v119_v13 = vpop.f32.mrb[0].mxu0 }
  0xf3   :  { %v198_v15 = vadd.f32 %v197_v11, %v119_v13  ;;  %v317_v16 = vpop.f32.mrb[1].mxu0 }
  0xf5   :  { %v208_v17 = vadd.f32 %v298_v14, %v198_v15 }
  0xf7   :  { %341 = vtanh.f32 %v208_v17  ;;  %v299_v20 = vmul.f32 -1.442695, %v208_v17 }
  0xf9   :  { %343 = vpow2.f32 %v299_v20 }
 0x101   :  { %v342_v18 = vpop.eup %341 }
 0x102   :  { %223 = vrot.lane.b32.xlu0 %v342_v18, %s449_s0 }
 0x103   :  { %v344_v21 = vpop.eup %343 }
 0x104   :  { %v213_v22 = vadd.f32 1.0, %v344_v21 }
 0x106   :  { %218 = vrot.lane.b32.xlu0 %v209_v19, %s449_s0  ;;  %345 = vrcp.f32 %v213_v22 }
 0x110   :  { %v346_v23 = vpop.eup %345 }
 0x174   :  { %v224_v24 = vpop.permute.xlu0 %223 }
 0x175   :  { %v226_v25 = vmul.f32 %v346_v23, %v224_v24 }
 0x177   :  { %228 = vrot.lane.b32.xlu1 %v226_v25, %s449_s0 }
 0x178   :  { %v219_v26 = vpop.permute.xlu0 %218 }
 0x179   :  { %v221_v27 = vmul.f32 %v346_v23, %v219_v26 }
 0x1e9   :  { %v229_v28 = vpop.permute.xlu1 %228 }
 0x1ea   :  { %v231_v29 = vadd.f32 %v229_v28, %v221_v27 }
 0x1ec   :  { %347 = vtanh.f32 %v231_v29  ;;  %244 = vrot.lane.b32.xlu0 %v231_v29, %s450_s1 }
 0x1f6   :  { %v348_v30 = vpop.eup %347 }
 0x1f7   :  { %234 = vrot.lane.b32.xlu1 %v348_v30, %s449_s0 }
 0x1fb   :  { %239 = vrot.lane.b32.xlu1 %v346_v23, %s451_s2 }
 0x25e   :  { %v245_v31 = vpop.permute.xlu0 %244 }
 0x25f   :  { %247 = vst.msk [vmem:[#allocation6] sm:$0xff] %vm49_vm3, %v245_v31 }
 0x260   :  { %382 = shalt.err (!%p379_p12)
}
 0x261   :  { %s383_s9 = scalar_lea.hbm %s574_s7, 128 }
 0x262   :  { %p384_p13 = scmp.ne.s32.totalorder %s574_s7, %s383_s9  ;;  %p387_p0 = scmp.lt.u32.totalorder %s383_s9, %s574_s7 }
 0x264   :  { %p389_p1 = pnand %p387_p0, %p384_p13 }
 0x266   :  { %392 = shalt.err (!%p389_p1)
}
 0x267   :  { %272 = dma.vmem_to_hbm [thread:$0]  %s270_s27, 128, %s574_s7, [#allocation7]  }
 0x268   :  { %s453_s16 = smov [#allocation5]  }
 0x269   :  { %v235_v32 = vpop.permute.xlu1 %234  ;;  %s259_s17 = sshll.u32 %s453_s16, 4  ;;  %s260_s17 = int_to_ptr.vmem [resolvable:$true] %s259_s17 }
 0x26a   :  { %v237_v33 = vmul.f32 %v346_v23, %v235_v32  ;;  %s393_s18 = scalar_lea.vmem %s260_s17, 128  ;;  %p398_p3 = scmp.lt.s32.totalorder %s260_s17, %s260_s17 }
 0x26b   :  { %p394_p2 = scmp.ne.s32.totalorder %s260_s17, %s393_s18  ;;  %p399_p4 = scmp.lt.s32.totalorder %s393_s18, %s393_s18 }
 0x26c   :  { %249 = vrot.lane.b32.xlu0 %v237_v33, %s451_s2 }
 0x26d   :  { %v240_v34 = vpop.permute.xlu1 %239  ;;  %p400_p5 = por %p399_p4, %p398_p3 }
 0x26e   :  { %242 = vst.msk [vmem:[#allocation5] sm:$0xff] %vm49_vm3, %v240_v34 }
 0x26f   :  { %p401_p6 = pnand %p400_p5, %p394_p2 }
 0x271   :  { %404 = shalt.err (!%p401_p6)
}
 0x272   :  { %s405_s7 = scalar_lea.hbm %s573_s6, 128 }
 0x273   :  { %p406_p7 = scmp.ne.s32.totalorder %s573_s6, %s405_s7  ;;  %p409_p8 = scmp.lt.u32.totalorder %s405_s7, %s573_s6 }
 0x275   :  { %p411_p9 = pnand %p409_p8, %p406_p7 }
 0x277   :  { %414 = shalt.err (!%p411_p9)
}
 0x278   :  { %262 = dma.vmem_to_hbm [thread:$0]  %s260_s17, 128, %s573_s6, [#allocation4]  }
 0x279   :  { %s454_s0 = smov [#allocation8]  }
 0x27a   :  { %s279_s25 = sshll.u32 %s454_s0, 4  ;;  %s280_s25 = int_to_ptr.vmem [resolvable:$true] %s279_s25 }
 0x27b   :  { %s415_s26 = scalar_lea.vmem %s280_s25, 128  ;;  %p420_p11 = scmp.lt.s32.totalorder %s280_s25, %s280_s25 }
 0x27c   :  { %p416_p10 = scmp.ne.s32.totalorder %s280_s25, %s415_s26  ;;  %p421_p12 = scmp.lt.s32.totalorder %s415_s26, %s415_s26 }
 0x27e   :  { %p422_p13 = por %p421_p12, %p420_p11 }
 0x280   :  { %p423_p0 = pnand %p422_p13, %p416_p10 }
 0x2de   :  { %v250_v35 = vpop.permute.xlu0 %249 }
 0x2df   :  { %252 = vst.msk [vmem:[#allocation8] sm:$0xff] %vm49_vm3, %v250_v35 }
 0x2e0   :  { %426 = shalt.err (!%p423_p0)
}
 0x2e1   :  { %s427_s5 = scalar_lea.hbm %s575_s8, 128 }
 0x2e2   :  { %p428_p1 = scmp.ne.s32.totalorder %s575_s8, %s427_s5  ;;  %p431_p2 = scmp.lt.u32.totalorder %s427_s5, %s575_s8 }
 0x2e4   :  { %p433_p3 = pnand %p431_p2, %p428_p1 }
 0x2e6   :  { %436 = shalt.err (!%p433_p3)
}
 0x2e7   :  { %282 = dma.vmem_to_hbm [thread:$0]  %s280_s25, 128, %s575_s8, [#allocation7]  }
 0x2e8   :  { %439 = dma.done.wait [#allocation4], 128  }
 0x2e9   :  { %440 = vsyncadd [#allocation4], 4294967168 }
 0x2ea   :  { %441 = dma.done.wait [#allocation7], 256  }
 0x2eb   :  { %442 = vsyncadd [#allocation7], 4294967040 }
 0x2ec   :  { %292 = vsyncpa [#allocation3], 1 }
 0x2ed   :  { %293 = vsyncpa [#allocation4], 1 }
 0x2ee   :  { %294 = vsyncpa [#allocation7], 1 }

</bundles_post_ra>
